<compile_context>
chip_gen: v7x
topology: tpu7x:2x2x1
jax: 0.10.0
libtpu: 0.0.40
codegen_flags: <defaults>
</compile_context>

<pallas_src>
import jax
import jax.numpy as jnp
from jax import lax
from jax.experimental import pallas as pl
from jax.experimental.pallas import tpu as pltpu


def _round_up(x, m):
    return ((x + m - 1) // m) * m


def _vmem_limit_bytes(pipelined_bytes, resident_bytes):
    """Tight per-call VMEM budget: 2x for double-buffered pipelined blocks + resident scratch,
    generous slack for Mosaic internal scratch, clamped to a per-generation ceiling."""
    need = 2 * pipelined_bytes + resident_bytes
    limit = 2 * need + (8 << 20)
    ceiling = 48 << 20  # safe fallback: below v7x's 64 MiB physical VMEM per TensorCore
    try:
        info = pltpu.get_tpu_info()
        cap = int(getattr(info, "vmem_capacity_bytes", 0) or 0)
        if cap:
            # ~48 MiB on v7x (64 MiB physical), ~96 MiB on v5e/v6e (128 MiB physical).
            ceiling = min(cap * 3 // 4, 100 << 20)
    except Exception:
        pass
    return max(min(limit, ceiling), 1 << 20)


def _make_rnn_kernel(T, CT, BBLK, keep_z_as_value, hoist_whh, unroll):
    needs_mask = (T % CT) != 0  # only the (non-demo) ragged-last-chunk case needs masking

    def kernel(x_ref, wih_ref, whh_ref, b_ref, wfc_ref, bfc_ref, out_ref, h_ref, *scratch):
        # x_ref  : (CT*BBLK, Hp-free F)  one time-chunk of one batch block (time-major rows)
        # wih_ref: (F, Hp)   whh_ref: (Hp, Hp)   b_ref: (1, Hp)  (= b_ih + b_hh)
        # wfc_ref: (Hp, Op)  bfc_ref: (1, Op)
        # out_ref: (BBLK, Op)            h_ref (scratch): (BBLK, Hp) carried hidden state
        c = pl.program_id(1)

        @pl.when(c == 0)
        def _():
            h_ref[...] = jnp.zeros_like(h_ref)

        # Phase 1: hoisted, time-independent input projection for this chunk — one MXU matmul.
        # Bias is folded here once, never re-broadcast inside the serial loop.
        z2d = (
            jnp.dot(x_ref[...], wih_ref[...], preferred_element_type=jnp.float32)
            + b_ref[...]
        )  # (CT*BBLK, Hp)

        # Hoist W_hh into registers only while it fits comfortably (<= 16 f32 vregs).
        whh = whh_ref[...] if hoist_whh else None

        def recur(h, z_t, t):
            hw = jnp.dot(h, whh if hoist_whh else whh_ref[...],
                         preferred_element_type=jnp.float32)
            h_new = jnp.tanh(z_t + hw)
            if needs_mask:
                # Zero-padded tail time steps must not advance the recurrence.
                h_new = jnp.where(c * CT + t < T, h_new, h)
            return h_new

        # Phase 2: strictly serial recurrence — only h @ W_hh^T (+tanh) on the critical path.
        if keep_z_as_value:
            # Tiny chunk: z never round-trips through VMEM; fully static unrolled loop.
            h = h_ref[...]
            for t in range(CT):
                h = recur(h, z2d[t * BBLK:(t + 1) * BBLK, :], t)
            h_ref[...] = h
        else:
            z_ref = scratch[0]
            z_ref[...] = z2d

            def step(t, h):
                start = pl.multiple_of(t * BBLK, BBLK)
                return recur(h, z_ref[pl.ds(start, BBLK), :], t)

            h_ref[...] = lax.fori_loop(0, CT, step, h_ref[...], unroll=unroll)

        # Phase 3: fused FC head on the final hidden state, emitted on the last chunk only.
        @pl.when(c == pl.num_programs(1) - 1)
        def _():
            out_ref[...] = (
                jnp.dot(h_ref[...], wfc_ref[...], preferred_element_type=jnp.float32)
                + bfc_ref[...]
            ).astype(out_ref.dtype)

    return kernel


def rnn_model_forward(x, w_ih, w_hh, b_ih, b_hh, w_fc, b_fc, *, max_chunk_t=128):
    """x: (T, B, F) float32. Returns (B, out_dim) float32 (n_layers = 1)."""
    T, B, F = x.shape
    H = w_ih.shape[0]
    O = w_fc.shape[0]
    f32 = jnp.float32

    # Lane/sublane-dense padded sizes.
    Hp = _round_up(H, 128)
    Op = _round_up(O, 128)

    # Batch-parallel blocking: up to 2 independent batch blocks (one per TensorCore on v7x);
    # a single block at tiny batches so v5e/v6e behavior is unchanged.
    num_b_blocks = 2 if B > 8 else 1
    BBLK = _round_up(max(-(-B // num_b_blocks), 8), 8)
    Bp_total = num_b_blocks * BBLK

    # Time chunking keeps the per-grid-step VMEM footprint bounded and overlaps x DMA w/ compute.
    CT = min(T, max_chunk_t)
    num_chunks = -(-T // CT)
    Tp = num_chunks * CT

    # Zero-pad x. Zero weight columns/rows keep padded hidden/output lanes inert; padded batch
    # rows and padded time steps are sliced off / masked.
    x_p = jnp.zeros((Tp, Bp_total, F), f32).at[:T, :B, :].set(x.astype(f32))
    # Lay out as (batch_block, time_chunk, CT*BBLK, F) so each grid step receives one lane-dense
    # 2-D slab with no in-kernel reshape.
    x_blk = (
        x_p.reshape(num_chunks, CT, num_b_blocks, BBLK, F)
        .transpose(2, 0, 1, 3, 4)
        .reshape(num_b_blocks, num_chunks, CT * BBLK, F)
    )

    wih_t = jnp.zeros((F, Hp), f32).at[:, :H].set(w_ih.T.astype(f32))
    whh_t = jnp.zeros((Hp, Hp), f32).at[:H, :H].set(w_hh.T.astype(f32))
    b_sum = jnp.zeros((1, Hp), f32).at[0, :H].set((b_ih + b_hh).astype(f32))
    wfc_t = jnp.zeros((Hp, Op), f32).at[:H, :O].set(w_fc.T.astype(f32))
    bfc = jnp.zeros((1, Op), f32).at[0, :O].set(b_fc.astype(f32))

    # Small chunks keep z in registers; bigger ones stage it through a VMEM scratch.
    z_bytes = CT * BBLK * Hp * 4
    keep_z_as_value = (CT <= 32) and (z_bytes <= 64 * 1024)
    hoist_whh = Hp <= 128
    unroll = min(CT, 8)

    kernel = _make_rnn_kernel(T, CT, BBLK, keep_z_as_value, hoist_whh, unroll)

    scratch_shapes = [pltpu.VMEM((BBLK, Hp), f32)]  # carried hidden state
    if not keep_z_as_value:
        scratch_shapes.append(pltpu.VMEM((CT * BBLK, Hp), f32))

    const_map = lambda bb, c: (0, 0)  # whole-array weight blocks, never re-fetched
    in_specs = [
        pl.BlockSpec((None, None, CT * BBLK, F), lambda bb, c: (bb, c, 0, 0)),  # x chunk
        pl.BlockSpec((F, Hp), const_map),
        pl.BlockSpec((Hp, Hp), const_map),
        pl.BlockSpec((1, Hp), const_map),
        pl.BlockSpec((Hp, Op), const_map),
        pl.BlockSpec((1, Op), const_map),
    ]
    out_spec = pl.BlockSpec((BBLK, Op), lambda bb, c: (bb, 0))

    pipelined_bytes = (
        CT * BBLK * F            # x chunk
        + F * Hp + Hp * Hp + Hp  # W_ih^T, W_hh^T, bias
        + Hp * Op + Op           # W_fc^T, bias
        + BBLK * Op              # output tile
    ) * 4
    resident_bytes = sum(BBLK * Hp for _ in scratch_shapes[:1]) * 4
    if not keep_z_as_value:
        resident_bytes += CT * BBLK * Hp * 4

    out_p = pl.pallas_call(
        kernel,
        out_shape=jax.ShapeDtypeStruct((Bp_total, Op), f32),
        grid_spec=pltpu.PrefetchScalarGridSpec(
            num_scalar_prefetch=0,
            grid=(num_b_blocks, num_chunks),
            in_specs=in_specs,
            out_specs=out_spec,
            scratch_shapes=scratch_shapes,
        ),
        compiler_params=pltpu.CompilerParams(
            dimension_semantics=("parallel", "arbitrary"),
            vmem_limit_bytes=_vmem_limit_bytes(pipelined_bytes, resident_bytes),
        ),
    )(x_blk, wih_t, whh_t, b_sum, wfc_t, bfc)

    return out_p[:B, :O]


def rnn_model_reference(x, w_ih, w_hh, b_ih, b_hh, w_fc, b_fc):
    T, B, F = x.shape
    H = w_ih.shape[0]
    h = jnp.zeros((B, H), jnp.float32)
    for t in range(T):
        h = jnp.tanh(x[t] @ w_ih.T + b_ih + h @ w_hh.T + b_hh)
    return h @ w_fc.T + b_fc


if __name__ == "__main__":
    # Small shapes consistent with the module's forward (time-major RNN input).
    seq_len, batch, in_feat, hidden, out_dim = 8, 4, 16, 32, 1

    key = jax.random.PRNGKey(0)
    ks = jax.random.split(key, 7)
    bound = 1.0 / jnp.sqrt(hidden)  # PyTorch nn.RNN / nn.Linear default init range

    x = jax.random.normal(ks[0], (seq_len, batch, in_feat), dtype=jnp.float32)
    w_ih = jax.random.uniform(ks[1], (hidden, in_feat), minval=-bound, maxval=bound)
    w_hh = jax.random.uniform(ks[2], (hidden, hidden), minval=-bound, maxval=bound)
    b_ih = jax.random.uniform(ks[3], (hidden,), minval=-bound, maxval=bound)
    b_hh = jax.random.uniform(ks[4], (hidden,), minval=-bound, maxval=bound)
    w_fc = jax.random.uniform(ks[5], (out_dim, hidden), minval=-bound, maxval=bound)
    b_fc = jax.random.uniform(ks[6], (out_dim,), minval=-bound, maxval=bound)

    out = rnn_model_forward(x, w_ih, w_hh, b_ih, b_hh, w_fc, b_fc)
    out = jax.block_until_ready(out)

    ref = rnn_model_reference(x, w_ih, w_hh, b_ih, b_hh, w_fc, b_fc)
    assert out.shape == (batch, out_dim), out.shape
    assert jnp.allclose(out, ref, atol=1e-5, rtol=1e-5), (out, ref)

    print("KERNEL_OK")
</pallas_src>

<mosaic_0001>
module attributes {stable_mosaic.version = 11 : i64} {
  func.func @kernel(%arg0: i32, %arg1: i32, %arg2: memref<1x1x64x16xf32, #tpu.memory_space<vmem>>, %arg3: memref<16x128xf32, #tpu.memory_space<vmem>>, %arg4: memref<128x128xf32, #tpu.memory_space<vmem>>, %arg5: memref<1x128xf32, #tpu.memory_space<vmem>>, %arg6: memref<128x128xf32, #tpu.memory_space<vmem>>, %arg7: memref<1x128xf32, #tpu.memory_space<vmem>>, %arg8: memref<8x128xf32, #tpu.memory_space<vmem>>, %arg9: memref<8x128xf32, #tpu.memory_space<vmem>>) attributes {dimension_semantics = [#tpu.dimension_semantics<parallel>, #tpu.dimension_semantics<arbitrary>], iteration_bounds = array<i64: 1, 1>, scalar_prefetch = 0 : i64, scratch_operands = 1 : i64, tpu.core_type = #tpu.core_type<tc>, window_params = [{transform_indices = @transform_0, window_bounds = array<i64: 1, 1, 64, 16>}, {pipeline_mode = #tpu.pipeline_mode<synchronous>, transform_indices = @transform_1, window_bounds = array<i64: 16, 128>}, {pipeline_mode = #tpu.pipeline_mode<synchronous>, transform_indices = @transform_2, window_bounds = array<i64: 128, 128>}, {pipeline_mode = #tpu.pipeline_mode<synchronous>, transform_indices = @transform_3, window_bounds = array<i64: 1, 128>}, {pipeline_mode = #tpu.pipeline_mode<synchronous>, transform_indices = @transform_4, window_bounds = array<i64: 128, 128>}, {pipeline_mode = #tpu.pipeline_mode<synchronous>, transform_indices = @transform_5, window_bounds = array<i64: 1, 128>}, {transform_indices = @transform_6, window_bounds = array<i64: 8, 128>}]} {
    %c0_i32 = arith.constant 0 : i32
    %0 = arith.cmpi eq, %arg1, %c0_i32 : i32
    %1 = arith.extui %0 : i1 to i32
    %c0_i32_0 = arith.constant 0 : i32
    %2 = arith.cmpi ne, %1, %c0_i32_0 : i32
    scf.if %2 {
      %cst_24 = arith.constant 0.000000e+00 : f32
      %48 = vector.broadcast %cst_24 : f32 to vector<8x128xf32>
      %c0_25 = arith.constant 0 : index
      %c0_26 = arith.constant 0 : index
      %49 = vector.load %arg9[%c0_25, %c0_26] : memref<8x128xf32, #tpu.memory_space<vmem>>, vector<8x128xf32>
      tpu.vector_store %arg9[%c0_25, %c0_26], %48 {strides = array<i32>} : memref<8x128xf32, #tpu.memory_space<vmem>>, vector<8x128xf32>,
    } else {
    }
    %c0 = arith.constant 0 : index
    %c0_1 = arith.constant 0 : index
    %c0_2 = arith.constant 0 : index
    %c0_3 = arith.constant 0 : index
    %3 = vector.load %arg2[%c0, %c0_1, %c0_2, %c0_3] : memref<1x1x64x16xf32, #tpu.memory_space<vmem>>, vector<1x1x64x16xf32>
    %4 = vector.shape_cast %3 : vector<1x1x64x16xf32> to vector<64x16xf32>
    %c0_4 = arith.constant 0 : index
    %c0_5 = arith.constant 0 : index
    %5 = vector.load %arg3[%c0_4, %c0_5] : memref<16x128xf32, #tpu.memory_space<vmem>>, vector<16x128xf32>
    %cst = arith.constant dense<0.000000e+00> : vector<64x128xf32>
    %6 = tpu.matmul %4, %5, %cst {dimension_numbers = #tpu.dot_dimension_numbers<[1], [0], [0], [1], [0, 0, 1, 1], [], []>} : vector<64x16xf32>, vector<16x128xf32>, vector<64x128xf32> -> vector<64x128xf32>
    %c0_6 = arith.constant 0 : index
    %c0_7 = arith.constant 0 : index
    %7 = vector.load %arg5[%c0_6, %c0_7] : memref<1x128xf32, #tpu.memory_space<vmem>>, vector<1x128xf32>
    %8 = vector.broadcast %7 : vector<1x128xf32> to vector<64x128xf32>
    %9 = arith.addf %6, %8 : vector<64x128xf32>
    %c0_8 = arith.constant 0 : index
    %c0_9 = arith.constant 0 : index
    %10 = vector.load %arg4[%c0_8, %c0_9] : memref<128x128xf32, #tpu.memory_space<vmem>>, vector<128x128xf32>
    %c0_10 = arith.constant 0 : index
    %c0_11 = arith.constant 0 : index
    %11 = vector.load %arg9[%c0_10, %c0_11] : memref<8x128xf32, #tpu.memory_space<vmem>>, vector<8x128xf32>
    %12 = vector.extract_strided_slice %9 {offsets = [0, 0], sizes = [8, 128], strides = [1, 1]} : vector<64x128xf32> to vector<8x128xf32>
    %cst_12 = arith.constant dense<0.000000e+00> : vector<8x128xf32>
    %13 = tpu.matmul %11, %10, %cst_12 {dimension_numbers = #tpu.dot_dimension_numbers<[1], [0], [0], [1], [0, 0, 1, 1], [], []>} : vector<8x128xf32>, vector<128x128xf32>, vector<8x128xf32> -> vector<8x128xf32>
    %14 = arith.addf %12, %13 : vector<8x128xf32>
    %15 = math.tanh %14 : vector<8x128xf32>
    %16 = vector.extract_strided_slice %9 {offsets = [8, 0], sizes = [8, 128], strides = [1, 1]} : vector<64x128xf32> to vector<8x128xf32>
    %cst_13 = arith.constant dense<0.000000e+00> : vector<8x128xf32>
    %17 = tpu.matmul %15, %10, %cst_13 {dimension_numbers = #tpu.dot_dimension_numbers<[1], [0], [0], [1], [0, 0, 1, 1], [], []>} : vector<8x128xf32>, vector<128x128xf32>, vector<8x128xf32> -> vector<8x128xf32>
    %18 = arith.addf %16, %17 : vector<8x128xf32>
    %19 = math.tanh %18 : vector<8x128xf32>
    %20 = vector.extract_strided_slice %9 {offsets = [16, 0], sizes = [8, 128], strides = [1, 1]} : vector<64x128xf32> to vector<8x128xf32>
    %cst_14 = arith.constant dense<0.000000e+00> : vector<8x128xf32>
    %21 = tpu.matmul %19, %10, %cst_14 {dimension_numbers = #tpu.dot_dimension_numbers<[1], [0], [0], [1], [0, 0, 1, 1], [], []>} : vector<8x128xf32>, vector<128x128xf32>, vector<8x128xf32> -> vector<8x128xf32>
    %22 = arith.addf %20, %21 : vector<8x128xf32>
    %23 = math.tanh %22 : vector<8x128xf32>
    %24 = vector.extract_strided_slice %9 {offsets = [24, 0], sizes = [8, 128], strides = [1, 1]} : vector<64x128xf32> to vector<8x128xf32>
    %cst_15 = arith.constant dense<0.000000e+00> : vector<8x128xf32>
    %25 = tpu.matmul %23, %10, %cst_15 {dimension_numbers = #tpu.dot_dimension_numbers<[1], [0], [0], [1], [0, 0, 1, 1], [], []>} : vector<8x128xf32>, vector<128x128xf32>, vector<8x128xf32> -> vector<8x128xf32>
    %26 = arith.addf %24, %25 : vector<8x128xf32>
    %27 = math.tanh %26 : vector<8x128xf32>
    %28 = vector.extract_strided_slice %9 {offsets = [32, 0], sizes = [8, 128], strides = [1, 1]} : vector<64x128xf32> to vector<8x128xf32>
    %cst_16 = arith.constant dense<0.000000e+00> : vector<8x128xf32>
    %29 = tpu.matmul %27, %10, %cst_16 {dimension_numbers = #tpu.dot_dimension_numbers<[1], [0], [0], [1], [0, 0, 1, 1], [], []>} : vector<8x128xf32>, vector<128x128xf32>, vector<8x128xf32> -> vector<8x128xf32>
    %30 = arith.addf %28, %29 : vector<8x128xf32>
    %31 = math.tanh %30 : vector<8x128xf32>
    %32 = vector.extract_strided_slice %9 {offsets = [40, 0], sizes = [8, 128], strides = [1, 1]} : vector<64x128xf32> to vector<8x128xf32>
    %cst_17 = arith.constant dense<0.000000e+00> : vector<8x128xf32>
    %33 = tpu.matmul %31, %10, %cst_17 {dimension_numbers = #tpu.dot_dimension_numbers<[1], [0], [0], [1], [0, 0, 1, 1], [], []>} : vector<8x128xf32>, vector<128x128xf32>, vector<8x128xf32> -> vector<8x128xf32>
    %34 = arith.addf %32, %33 : vector<8x128xf32>
    %35 = math.tanh %34 : vector<8x128xf32>
    %36 = vector.extract_strided_slice %9 {offsets = [48, 0], sizes = [8, 128], strides = [1, 1]} : vector<64x128xf32> to vector<8x128xf32>
    %cst_18 = arith.constant dense<0.000000e+00> : vector<8x128xf32>
    %37 = tpu.matmul %35, %10, %cst_18 {dimension_numbers = #tpu.dot_dimension_numbers<[1], [0], [0], [1], [0, 0, 1, 1], [], []>} : vector<8x128xf32>, vector<128x128xf32>, vector<8x128xf32> -> vector<8x128xf32>
    %38 = arith.addf %36, %37 : vector<8x128xf32>
    %39 = math.tanh %38 : vector<8x128xf32>
    %40 = vector.extract_strided_slice %9 {offsets = [56, 0], sizes = [8, 128], strides = [1, 1]} : vector<64x128xf32> to vector<8x128xf32>
    %cst_19 = arith.constant dense<0.000000e+00> : vector<8x128xf32>
    %41 = tpu.matmul %39, %10, %cst_19 {dimension_numbers = #tpu.dot_dimension_numbers<[1], [0], [0], [1], [0, 0, 1, 1], [], []>} : vector<8x128xf32>, vector<128x128xf32>, vector<8x128xf32> -> vector<8x128xf32>
    %42 = arith.addf %40, %41 : vector<8x128xf32>
    %43 = math.tanh %42 : vector<8x128xf32>
    %c0_20 = arith.constant 0 : index
    %c0_21 = arith.constant 0 : index
    %44 = vector.load %arg9[%c0_20, %c0_21] : memref<8x128xf32, #tpu.memory_space<vmem>>, vector<8x128xf32>
    tpu.vector_store %arg9[%c0_20, %c0_21], %43 {strides = array<i32>} : memref<8x128xf32, #tpu.memory_space<vmem>>, vector<8x128xf32>,
    %c0_i32_22 = arith.constant 0 : i32
    %45 = arith.cmpi eq, %arg1, %c0_i32_22 : i32
    %46 = arith.extui %45 : i1 to i32
    %c0_i32_23 = arith.constant 0 : i32
    %47 = arith.cmpi ne, %46, %c0_i32_23 : i32
    scf.if %47 {
      %c0_24 = arith.constant 0 : index
      %c0_25 = arith.constant 0 : index
      %48 = vector.load %arg9[%c0_24, %c0_25] : memref<8x128xf32, #tpu.memory_space<vmem>>, vector<8x128xf32>
      %c0_26 = arith.constant 0 : index
      %c0_27 = arith.constant 0 : index
      %49 = vector.load %arg6[%c0_26, %c0_27] : memref<128x128xf32, #tpu.memory_space<vmem>>, vector<128x128xf32>
      %cst_28 = arith.constant dense<0.000000e+00> : vector<8x128xf32>
      %50 = tpu.matmul %48, %49, %cst_28 {dimension_numbers = #tpu.dot_dimension_numbers<[1], [0], [0], [1], [0, 0, 1, 1], [], []>} : vector<8x128xf32>, vector<128x128xf32>, vector<8x128xf32> -> vector<8x128xf32>
      %c0_29 = arith.constant 0 : index
      %c0_30 = arith.constant 0 : index
      %51 = vector.load %arg7[%c0_29, %c0_30] : memref<1x128xf32, #tpu.memory_space<vmem>>, vector<1x128xf32>
      %52 = vector.broadcast %51 : vector<1x128xf32> to vector<8x128xf32>
      %53 = arith.addf %50, %52 : vector<8x128xf32>
      %c0_31 = arith.constant 0 : index
      %c0_32 = arith.constant 0 : index
      %54 = vector.load %arg8[%c0_31, %c0_32] : memref<8x128xf32, #tpu.memory_space<vmem>>, vector<8x128xf32>
      tpu.vector_store %arg8[%c0_31, %c0_32], %53 {strides = array<i32>} : memref<8x128xf32, #tpu.memory_space<vmem>>, vector<8x128xf32>,
    } else {
    }
    return
  }
  func.func @transform_0(%arg0: i32, %arg1: i32) -> (i32, i32, i32, i32) {
    %c0_i32 = arith.constant 0 : i32
    %c0_i32_0 = arith.constant 0 : i32
    %c0_i32_1 = arith.constant 0 : i32
    return %arg0, %arg1, %c0_i32, %c0_i32_0 : i32, i32, i32, i32
  }
  func.func @transform_1(%arg0: i32, %arg1: i32) -> (i32, i32) {
    %c0_i32 = arith.constant 0 : i32
    %c0_i32_0 = arith.constant 0 : i32
    %c0_i32_1 = arith.constant 0 : i32
    return %c0_i32, %c0_i32_0 : i32, i32
  }
  func.func @transform_2(%arg0: i32, %arg1: i32) -> (i32, i32) {
    %c0_i32 = arith.constant 0 : i32
    %c0_i32_0 = arith.constant 0 : i32
    %c0_i32_1 = arith.constant 0 : i32
    return %c0_i32, %c0_i32_0 : i32, i32
  }
  func.func @transform_3(%arg0: i32, %arg1: i32) -> (i32, i32) {
    %c0_i32 = arith.constant 0 : i32
    %c0_i32_0 = arith.constant 0 : i32
    %c0_i32_1 = arith.constant 0 : i32
    return %c0_i32, %c0_i32_0 : i32, i32
  }
  func.func @transform_4(%arg0: i32, %arg1: i32) -> (i32, i32) {
    %c0_i32 = arith.constant 0 : i32
    %c0_i32_0 = arith.constant 0 : i32
    %c0_i32_1 = arith.constant 0 : i32
    return %c0_i32, %c0_i32_0 : i32, i32
  }
  func.func @transform_5(%arg0: i32, %arg1: i32) -> (i32, i32) {
    %c0_i32 = arith.constant 0 : i32
    %c0_i32_0 = arith.constant 0 : i32
    %c0_i32_1 = arith.constant 0 : i32
    return %c0_i32, %c0_i32_0 : i32, i32
  }
  func.func @transform_6(%arg0: i32, %arg1: i32) -> (i32, i32) {
    %c0_i32 = arith.constant 0 : i32
    %c0_i32_0 = arith.constant 0 : i32
    return %arg0, %c0_i32 : i32, i32
  }
}

</mosaic_0001>

<bundles_post_ra>
// kernel: tpu_custom_call.1
= control target key start
LH: loop header
LB: loop body
LE: loop exit
PB: predicated region body
PF: predicated region fallthrough
CT: control target
= control target key end

     0   :  { %11 = vsyncpa [#allocation4], 0  ;;  %s2048_s0 = inlined_call_operand.vmem [shape: f32[1,1,64,16], index: 0, kind: input, shape index: {}]   ;;  %s2049_s1 = inlined_call_operand.vmem [shape: f32[16,128], index: 1, kind: input, shape index: {}]   ;;  %s2050_s2 = inlined_call_operand.hbm [shape: f32[128,128], index: 2, kind: input, shape index: {}]   ;;  %s2051_s3 = inlined_call_operand.vmem [shape: f32[1,128], index: 3, kind: input, shape index: {}]   ;;  %s2052_s4 = inlined_call_operand.hbm [shape: f32[128,128], index: 4, kind: input, shape index: {}]   ;;  %s2053_s5 = inlined_call_operand.vmem [shape: f32[1,128], index: 5, kind: input, shape index: {}]   ;;  %s2054_s6 = inlined_call_operand.hbm [shape: f32[8,128], index: 6, kind: output, shape index: {}]  }
   0x1   :  { %12 = vsyncpa [#allocation7], 0 }
   0x2   :  { %13 = vsyncpa [#allocation5], 0  ;;  %s1732_s21 = smov [#allocation3]   ;;  %s1660_s25 = scalar_lea.hbm %s2050_s2, 2048 }
   0x3   :  { %s23_s22 = sshll.u32 %s1732_s21, 4  ;;  %p1661_p0 = scmp.ne.s32.totalorder %s2050_s2, %s1660_s25  ;;  %s24_s22 = int_to_ptr.vmem [resolvable:$true] %s23_s22 }
   0x4   :  { %p1664_p1 = scmp.lt.u32.totalorder %s1660_s25, %s2050_s2 }
   0x6   :  { %p1666_p2 = pnand %p1664_p1, %p1661_p0 }
   0x8   :  { %1669 = shalt.err (!%p1666_p2)
}
   0x9   :  { %s1670_s30 = scalar_lea.vmem %s24_s22, 2048  ;;  %p1675_p4 = scmp.lt.s32.totalorder %s24_s22, %s24_s22 }
   0xa   :  { %p1671_p3 = scmp.ne.s32.totalorder %s24_s22, %s1670_s30  ;;  %p1676_p5 = scmp.lt.s32.totalorder %s1670_s30, %s1670_s30 }
   0xc   :  { %p1677_p6 = por %p1676_p5, %p1675_p4 }
   0xe   :  { %p1678_p7 = pnand %p1677_p6, %p1671_p3 }
  0x10   :  { %1681 = shalt.err (!%p1678_p7)
}
  0x11   :  { %s1733_s7 = smov 128   ;;  %s1734_s8 = smov 8  }
  0x12   :  { %29 = dma.hbm_to_vmem [thread:$0]  %s2050_s2, 2048, %s24_s22, [#allocation4], %s1733_s7, %s1733_s7, %s1734_s8  }
  0x13   :  { %s1735_s11 = smov [#allocation6]   ;;  %s1682_s15 = scalar_lea.hbm %s2052_s4, 2048 }
  0x14   :  { %s37_s12 = sshll.u32 %s1735_s11, 4  ;;  %p1683_p8 = scmp.ne.s32.totalorder %s2052_s4, %s1682_s15  ;;  %s38_s12 = int_to_ptr.vmem [resolvable:$true] %s37_s12 }
  0x15   :  { %p1686_p9 = scmp.lt.u32.totalorder %s1682_s15, %s2052_s4 }
  0x17   :  { %p1688_p10 = pnand %p1686_p9, %p1683_p8 }
  0x19   :  { %1691 = shalt.err (!%p1688_p10)
}
  0x1a   :  { %s1692_s20 = scalar_lea.vmem %s38_s12, 2048  ;;  %p1697_p12 = scmp.lt.s32.totalorder %s38_s12, %s38_s12 }
  0x1b   :  { %p1693_p11 = scmp.ne.s32.totalorder %s38_s12, %s1692_s20  ;;  %p1698_p13 = scmp.lt.s32.totalorder %s1692_s20, %s1692_s20 }
  0x1d   :  { %p1699_p0 = por %p1698_p13, %p1697_p12 }
  0x1f   :  { %p1700_p1 = pnand %p1699_p0, %p1693_p11 }
  0x21   :  { %1703 = shalt.err (!%p1700_p1)
}
  0x22   :  { %43 = dma.hbm_to_vmem [thread:$0]  %s2052_s4, 2048, %s38_s12, [#allocation7], %s1733_s7, %s1733_s7, %s1734_s8  }
  0x23   :  { %1726 = dma.done.wait [#allocation4], 2048  }
  0x24   :  { %1727 = vsyncadd [#allocation4], 4294965248 }
  0x25   :  { %1728 = dma.done.wait [#allocation7], 2048  }
  0x26   :  { %1729 = vsyncadd [#allocation7], 4294965248  ;;  %v1736_v0 = vmov 0.0|0.0   ;;  %vm1737_vm0 = vmmov 0   ;;  %v1738_v1 = vmov 0.0   ;;  %v204_v2 = vld [vmem:[#allocation3] sm:$0xff] }
  0x27   :  { %1420 = vmatprep.subr.bf16.mxu1 %v1736_v0  ;;  %1133 = vmatprep.mubr.msk.f32.mxu1 %vm1737_vm0, %v1738_v1  ;;  %v205_v3 = vld [vmem:[#allocation3 + $0x8] sm:$0xff]  ;;  %v206_v4 = vld [vmem:[#allocation3 + $0x10] sm:$0xff]  ;;  %v207_v6 = vld [vmem:[#allocation3 + $0x18] sm:$0xff]  ;;  %vm74_vm1 = vcmask 130048   ;;  %s1739_s18 = smov [#allocation8]  }
  0x28   :  { %v1802_v5 = vpack.c.bf16 %v205_v3, %v204_v2  ;;  %v1805_v7 = vpack.c.bf16 %v207_v6, %v206_v4  ;;  %v208_v8 = vld [vmem:[#allocation3 + $0x20] sm:$0xff]  ;;  %v209_v9 = vld [vmem:[#allocation3 + $0x28] sm:$0xff]  ;;  %v210_v15 = vld [vmem:[#allocation3 + $0x30] sm:$0xff]  ;;  %s902_s19 = sshll.u32 %s1739_s18, 4  ;;  %s903_s19 = int_to_ptr.vmem [resolvable:$true] %s902_s19 }
  0x29   :  { %v65_v10 = vld [vmem:[%s2049_s1] sm:$0xff]  ;;  %v66_v11 = vld [vmem:[%s2049_s1 + $0x8] sm:$0xff]  ;;  %v1819_v14 = vpack.c.bf16 %v209_v9, %v208_v8  ;;  %v211_v16 = vld [vmem:[#allocation3 + $0x38] sm:$0xff]  ;;  %s1704_s20 = scalar_lea.vmem %s903_s19, 128  ;;  %p1709_p3 = scmp.lt.s32.totalorder %s903_s19, %s903_s19 }
  0x2a   :  { %1422 = vmatpush3.bf16.msra.mxu1 %v1802_v5  ;;  %v1416_v12 = vpack.c.bf16 %v66_v11, %v65_v10  ;;  %v57_v13 = vld [vmem:[%s2048_s0] sm:$0xff]  ;;  %v58_v17 = vld [vmem:[%s2048_s0 + $0x8] sm:$0xff]  ;;  %v1827_v18 = vpack.c.bf16 %v211_v16, %v210_v15  ;;  %v214_v22 = vld [vmem:[#allocation3 + $0x50] sm:$0xff]  ;;  %p1705_p2 = scmp.ne.s32.totalorder %s903_s19, %s1704_s20  ;;  %p1710_p4 = scmp.lt.s32.totalorder %s1704_s20, %s1704_s20 }
  0x2b   :  { %1423 = vmatprep.subr.bf16.mxu1 %v1736_v0  ;;  %1089 = vmatprep.mubr.msk.f32.mxu0 %vm74_vm1, %v57_v13  ;;  %v212_v19 = vld [vmem:[#allocation3 + $0x40] sm:$0xff]  ;;  %v213_v20 = vld [vmem:[#allocation3 + $0x48] sm:$0xff]  ;;  %v215_v23 = vld [vmem:[#allocation3 + $0x58] sm:$0xff] }
  0x2c   :  { %1417 = vmatprep.subr.bf16.mxu0 %v1416_v12  ;;  %v1834_v21 = vpack.c.bf16 %v213_v20, %v212_v19  ;;  %v1840_v24 = vpack.c.bf16 %v215_v23, %v214_v22  ;;  %v216_v25 = vld [vmem:[#allocation3 + $0x60] sm:$0xff]  ;;  %v217_v26 = vld [vmem:[#allocation3 + $0x68] sm:$0xff]  ;;  %v218_v28 = vld [vmem:[#allocation3 + $0x70] sm:$0xff]  ;;  %p1711_p5 = por %p1710_p4, %p1709_p3 }
  0x2d   :  { %1419 = vmatpush3.bf16.msra.mxu0 %v1416_v12  ;;  %v1846_v27 = vpack.c.bf16 %v217_v26, %v216_v25  ;;  %v219_v29 = vld [vmem:[#allocation3 + $0x78] sm:$0xff]  ;;  %v59_v31 = vld [vmem:[%s2048_s0 + $0x10] sm:$0xff]  ;;  %v61_v33 = vld [vmem:[%s2048_s0 + $0x20] sm:$0xff] }
  0x2e   :  { %1425 = vmatpush3.bf16.msra.mxu1 %v1805_v7  ;;  %1444 = vmatprep.subr.bf16.mxu0 %v1736_v0  ;;  %v1852_v30 = vpack.c.bf16 %v219_v29, %v218_v28  ;;  %v60_v32 = vld [vmem:[%s2048_s0 + $0x18] sm:$0xff]  ;;  %v62_v34 = vld [vmem:[%s2048_s0 + $0x28] sm:$0xff]  ;;  %v63_v35 = vld [vmem:[%s2048_s0 + $0x30] sm:$0xff]  ;;  %p1712_p6 = pnand %p1711_p5, %p1705_p2 }
  0x2f   :  { %1426 = vmatprep.subr.bf16.mxu1 %v1736_v0  ;;  %v64_v36 = vld [vmem:[%s2048_s0 + $0x38] sm:$0xff]  ;;  %v1913_v39 = vld [vmem:[%s2051_s3] ss:$0 sm:$0xff]  ;;  %v803_v15 = vld [vmem:[#allocation6 + $0x8] sm:$0xff] }
  0x30   :  { %1090 = vmatmul.mubr.msk.f32.vlgmr.msra.gmra.mrb[0].mxu0 %vm74_vm1, %v58_v17  ;;  %v804_v16 = vld [vmem:[#allocation6 + $0x10] sm:$0xff]  ;;  %v806_v20 = vld [vmem:[#allocation6 + $0x20] sm:$0xff]  ;;  %v811_v26 = vld [vmem:[#allocation6 + $0x48] sm:$0xff] }
  0x31   :  { %1446 = vmatpush3.bf16.msra.mxu0 %v1802_v5  ;;  %1092 = vmatprep.mubr.msk.f32.mxu0 %vm74_vm1, %v59_v31  ;;  %v808_v23 = vld [vmem:[#allocation6 + $0x30] sm:$0xff] }
  0x32   :  { %1428 = vmatpush3.bf16.msra.mxu1 %v1819_v14  ;;  %1447 = vmatprep.subr.bf16.mxu0 %v1736_v0 }
  0x33   :  { %1429 = vmatprep.subr.bf16.mxu1 %v1736_v0 }
  0x34   :  { %1093 = vmatmul.mubr.msk.f32.gmra.mrb[2].mxu0 %vm74_vm1, %v60_v32 }
  0x35   :  { %1449 = vmatpush3.bf16.msra.mxu0 %v1805_v7  ;;  %1095 = vmatprep.mubr.msk.f32.mxu0 %vm74_vm1, %v61_v33  ;;  %v812_v33 = vld [vmem:[#allocation6 + $0x50] sm:$0xff] }
  0x36   :  { %1431 = vmatpush3.bf16.msra.mxu1 %v1827_v18  ;;  %1450 = vmatprep.subr.bf16.mxu0 %v1736_v0 }
  0x37   :  { %1432 = vmatprep.subr.bf16.mxu1 %v1736_v0 }
  0x38   :  { %1096 = vmatmul.mubr.msk.f32.gmra.mrb[4].mxu0 %vm74_vm1, %v62_v34  ;;  %v813_v34 = vld [vmem:[#allocation6 + $0x58] sm:$0xff] }
  0x39   :  { %1452 = vmatpush3.bf16.msra.mxu0 %v1819_v14  ;;  %1098 = vmatprep.mubr.msk.f32.mxu0 %vm74_vm1, %v63_v35  ;;  %v1628_v35 = vpack.c.bf16 %v813_v34, %v812_v33 }
  0x3a   :  { %1434 = vmatpush3.bf16.msra.mxu1 %v1834_v21  ;;  %1453 = vmatprep.subr.bf16.mxu0 %v1736_v0 }
  0x3b   :  { %1435 = vmatprep.subr.bf16.mxu1 %v1736_v0 }
  0x3c   :  { %1099 = vmatmul.mubr.msk.f32.gmra.mrb[6].mxu0 %vm74_vm1, %v64_v36  ;;  %v814_v36 = vld [vmem:[#allocation6 + $0x60] sm:$0xff] }
  0x3d   :  { %1455 = vmatpush3.bf16.msra.mxu0 %v1827_v18  ;;  %1168 = vmatprep.mubr.msk.f32.mxu0 %vm1737_vm0, %v1738_v1 }
  0x3e   :  { %1437 = vmatpush3.bf16.msra.mxu1 %v1840_v24  ;;  %1456 = vmatprep.subr.bf16.mxu0 %v1736_v0 }
  0x3f   :  { %1438 = vmatprep.subr.bf16.mxu1 %v1736_v0 }
  0x41   :  { %1458 = vmatpush3.bf16.msra.mxu0 %v1834_v21 }
  0x42   :  { %1440 = vmatpush3.bf16.msra.mxu1 %v1846_v27  ;;  %1459 = vmatprep.subr.bf16.mxu0 %v1736_v0 }
  0x43   :  { %1441 = vmatprep.subr.bf16.mxu1 %v1736_v0 }
  0x45   :  { %1461 = vmatpush3.bf16.msra.mxu0 %v1840_v24 }
  0x46   :  { %1443 = vmatpush3.bf16.msra.mxu1 %v1852_v30  ;;  %1462 = vmatprep.subr.bf16.mxu0 %v1736_v0 }
  0x47   :  { %1468 = vmatprep.subr.bf16.mxu1 %v1736_v0 }
  0x49   :  { %1134 = vmatmul.mubr.f32.vlgmr.msra.gmra.mrb[0].mxu1 %v1738_v1  ;;  %1464 = vmatpush3.bf16.msra.mxu0 %v1846_v27 }
  0x4a   :  { %1470 = vmatpush3.bf16.msra.mxu1 %v1802_v5  ;;  %1203 = vmatprep.mubr.msk.f32.mxu1 %vm1737_vm0, %v1738_v1 }
  0x4b   :  { %1471 = vmatprep.subr.bf16.mxu1 %v1736_v0  ;;  %1465 = vmatprep.subr.bf16.mxu0 %v1736_v0 }
  0x4d   :  { %1467 = vmatpush3.bf16.msra.mxu0 %v1852_v30 }
  0x4e   :  { %1473 = vmatpush3.bf16.msra.mxu1 %v1805_v7  ;;  %1492 = vmatprep.subr.bf16.mxu0 %v1736_v0 }
  0x4f   :  { %1474 = vmatprep.subr.bf16.mxu1 %v1736_v0 }
  0x52   :  { %1476 = vmatpush3.bf16.msra.mxu1 %v1819_v14 }
  0x53   :  { %1477 = vmatprep.subr.bf16.mxu1 %v1736_v0 }
  0x56   :  { %1479 = vmatpush3.bf16.msra.mxu1 %v1827_v18 }
  0x57   :  { %1480 = vmatprep.subr.bf16.mxu1 %v1736_v0 }
  0x5a   :  { %1482 = vmatpush3.bf16.msra.mxu1 %v1834_v21 }
  0x5b   :  { %1483 = vmatprep.subr.bf16.mxu1 %v1736_v0 }
  0x5e   :  { %1485 = vmatpush3.bf16.msra.mxu1 %v1840_v24 }
  0x5f   :  { %1486 = vmatprep.subr.bf16.mxu1 %v1736_v0 }
  0x62   :  { %1488 = vmatpush3.bf16.msra.mxu1 %v1846_v27 }
  0x63   :  { %1489 = vmatprep.subr.bf16.mxu1 %v1736_v0 }
  0x66   :  { %1491 = vmatpush3.bf16.msra.mxu1 %v1852_v30 }
  0x67   :  { %1516 = vmatprep.subr.bf16.mxu1 %v1736_v0 }
 0x103   :  { %v1091_v37 = vpop.f32.mrb[0].mxu0 }
 0x104   :  { %v165_v38 = vpop.f32.mrb[1].mxu0  ;;  %v171_v51 = vadd.f32 %v1091_v37, %v1913_v39  ;;  %v815_v37 = vld [vmem:[#allocation6 + $0x68] sm:$0xff] }
 0x105   :  { %v166_v40 = vadd.f32 %v1913_v39, %v165_v38  ;;  %v1631_v38 = vpack.c.bf16 %v815_v37, %v814_v36 }
 0x107   :  { %v1094_v45 = vpop.f32.mrb[2].mxu0 }
 0x108   :  { %v175_v46 = vpop.f32.mrb[3].mxu0  ;;  %v181_v61 = vadd.f32 %v1094_v45, %v1913_v39 }
 0x109   :  { %v176_v56 = vadd.f32 %v1913_v39, %v175_v46 }
 0x10b   :  { %v1934_v47 = vpop.f32.mrb[4].mxu0 }
 0x10c   :  { %v1936_v48 = vpop.f32.mrb[5].mxu0 }
 0x10d   :  { %v186_v4 = vadd.f32 %v1913_v39, %v1936_v48  ;;  %v921_v48 = vld [vmem:[%s2053_s5] ss:$0 sm:$0xff] }
 0x10f   :  { %v1938_v49 = vpop.f32.mrb[6].mxu0 }
 0x110   :  { %v1940_v50 = vpop.f32.mrb[7].mxu0 }
 0x111   :  { %v196_v28 = vadd.f32 %v1913_v39, %v1940_v50 }
 0x11c   :  { %v287_v41 = vpop.f32.mrb[0].mxu1 }
 0x11d   :  { %v291_v42 = vadd.f32 %v287_v41, %v166_v40  ;;  %v1135_v43 = vpop.f32.mrb[1].mxu1  ;;  %v816_v40 = vld [vmem:[#allocation6 + $0x70] sm:$0xff]  ;;  %v817_v41 = vld [vmem:[#allocation6 + $0x78] sm:$0xff] }
 0x11e   :  { %v201_v43 = vadd.f32 %v1938_v49, %v1913_v39 }
 0x11f   :  { %1644 = vtanh.f32 %v291_v42  ;;  %v1634_v42 = vpack.c.bf16 %v817_v41, %v816_v40 }
 0x129   :  { %v1645_v44 = vpop.eup %1644 }
 0x12a   :  { %1169 = vmatmul.mubr.f32.vlgmr.msra.gmra.mrb[8].mxu0 %v1645_v44 }
 0x12b   :  { %1494 = vmatpush3.bf16.msra.mxu0 %v1802_v5  ;;  %1238 = vmatprep.mubr.msk.f32.mxu0 %vm1737_vm0, %v1738_v1 }
 0x12c   :  { %1495 = vmatprep.subr.bf16.mxu0 %v1736_v0 }
 0x12f   :  { %1497 = vmatpush3.bf16.msra.mxu0 %v1805_v7 }
 0x130   :  { %1498 = vmatprep.subr.bf16.mxu0 %v1736_v0 }
 0x133   :  { %1500 = vmatpush3.bf16.msra.mxu0 %v1819_v14 }
 0x134   :  { %1501 = vmatprep.subr.bf16.mxu0 %v1736_v0 }
 0x137   :  { %1503 = vmatpush3.bf16.msra.mxu0 %v1827_v18 }
 0x138   :  { %1504 = vmatprep.subr.bf16.mxu0 %v1736_v0 }
 0x13b   :  { %1506 = vmatpush3.bf16.msra.mxu0 %v1834_v21 }
 0x13c   :  { %1507 = vmatprep.subr.bf16.mxu0 %v1736_v0 }
 0x13f   :  { %1509 = vmatpush3.bf16.msra.mxu0 %v1840_v24 }
 0x140   :  { %1510 = vmatprep.subr.bf16.mxu0 %v1736_v0 }
 0x143   :  { %1512 = vmatpush3.bf16.msra.mxu0 %v1846_v27 }
 0x144   :  { %1513 = vmatprep.subr.bf16.mxu0 %v1736_v0 }
 0x147   :  { %1515 = vmatpush3.bf16.msra.mxu0 %v1852_v30 }
 0x148   :  { %1540 = vmatprep.subr.bf16.mxu0 %v1736_v0 }
 0x1fd   :  { %v359_v52 = vpop.f32.mrb[8].mxu0 }
 0x1fe   :  { %v363_v53 = vadd.f32 %v359_v52, %v171_v51  ;;  %v1170_v54 = vpop.f32.mrb[9].mxu0 }
 0x200   :  { %1646 = vtanh.f32 %v363_v53 }
 0x20a   :  { %v1647_v55 = vpop.eup %1646 }
 0x20b   :  { %1204 = vmatmul.mubr.f32.vlgmr.msra.gmra.mrb[2].mxu1 %v1647_v55 }
 0x20c   :  { %1518 = vmatpush3.bf16.msra.mxu1 %v1802_v5  ;;  %1273 = vmatprep.mubr.msk.f32.mxu1 %vm1737_vm0, %v1738_v1 }
 0x20d   :  { %1519 = vmatprep.subr.bf16.mxu1 %v1736_v0 }
 0x210   :  { %1521 = vmatpush3.bf16.msra.mxu1 %v1805_v7 }
 0x211   :  { %1522 = vmatprep.subr.bf16.mxu1 %v1736_v0 }
 0x214   :  { %1524 = vmatpush3.bf16.msra.mxu1 %v1819_v14 }
 0x215   :  { %1525 = vmatprep.subr.bf16.mxu1 %v1736_v0 }
 0x218   :  { %1527 = vmatpush3.bf16.msra.mxu1 %v1827_v18 }
 0x219   :  { %1528 = vmatprep.subr.bf16.mxu1 %v1736_v0 }
 0x21c   :  { %1530 = vmatpush3.bf16.msra.mxu1 %v1834_v21 }
 0x21d   :  { %1531 = vmatprep.subr.bf16.mxu1 %v1736_v0 }
 0x220   :  { %1533 = vmatpush3.bf16.msra.mxu1 %v1840_v24 }
 0x221   :  { %1534 = vmatprep.subr.bf16.mxu1 %v1736_v0 }
 0x224   :  { %1536 = vmatpush3.bf16.msra.mxu1 %v1846_v27 }
 0x225   :  { %1537 = vmatprep.subr.bf16.mxu1 %v1736_v0 }
 0x228   :  { %1539 = vmatpush3.bf16.msra.mxu1 %v1852_v30 }
 0x229   :  { %1564 = vmatprep.subr.bf16.mxu1 %v1736_v0 }
 0x2de   :  { %v431_v57 = vpop.f32.mrb[2].mxu1 }
 0x2df   :  { %v435_v58 = vadd.f32 %v431_v57, %v176_v56  ;;  %v1205_v59 = vpop.f32.mrb[3].mxu1 }
 0x2e1   :  { %1648 = vtanh.f32 %v435_v58 }
 0x2eb   :  { %v1649_v60 = vpop.eup %1648 }
 0x2ec   :  { %1239 = vmatmul.mubr.f32.vlgmr.msra.gmra.mrb[10].mxu0 %v1649_v60 }
 0x2ed   :  { %1542 = vmatpush3.bf16.msra.mxu0 %v1802_v5  ;;  %1308 = vmatprep.mubr.msk.f32.mxu0 %vm1737_vm0, %v1738_v1 }
 0x2ee   :  { %1543 = vmatprep.subr.bf16.mxu0 %v1736_v0 }
 0x2f1   :  { %1545 = vmatpush3.bf16.msra.mxu0 %v1805_v7 }
 0x2f2   :  { %1546 = vmatprep.subr.bf16.mxu0 %v1736_v0 }
 0x2f5   :  { %1548 = vmatpush3.bf16.msra.mxu0 %v1819_v14 }
 0x2f6   :  { %1549 = vmatprep.subr.bf16.mxu0 %v1736_v0 }
 0x2f9   :  { %1551 = vmatpush3.bf16.msra.mxu0 %v1827_v18 }
 0x2fa   :  { %1552 = vmatprep.subr.bf16.mxu0 %v1736_v0 }
 0x2fd   :  { %1554 = vmatpush3.bf16.msra.mxu0 %v1834_v21 }
 0x2fe   :  { %1555 = vmatprep.subr.bf16.mxu0 %v1736_v0 }
 0x301   :  { %1557 = vmatpush3.bf16.msra.mxu0 %v1840_v24 }
 0x302   :  { %1558 = vmatprep.subr.bf16.mxu0 %v1736_v0 }
 0x305   :  { %1560 = vmatpush3.bf16.msra.mxu0 %v1846_v27 }
 0x306   :  { %1561 = vmatprep.subr.bf16.mxu0 %v1736_v0 }
 0x309   :  { %1563 = vmatpush3.bf16.msra.mxu0 %v1852_v30 }
 0x30a   :  { %1588 = vmatprep.subr.bf16.mxu0 %v1736_v0 }
 0x3bf   :  { %v503_v62 = vpop.f32.mrb[10].mxu0 }
 0x3c0   :  { %v507_v63 = vadd.f32 %v503_v62, %v181_v61  ;;  %v1240_v2 = vpop.f32.mrb[11].mxu0 }
 0x3c2   :  { %1650 = vtanh.f32 %v507_v63 }
 0x3cc   :  { %v1651_v3 = vpop.eup %1650 }
 0x3cd   :  { %1274 = vmatmul.mubr.f32.vlgmr.msra.gmra.mrb[4].mxu1 %v1651_v3 }
 0x3ce   :  { %1566 = vmatpush3.bf16.msra.mxu1 %v1802_v5  ;;  %1343 = vmatprep.mubr.msk.f32.mxu1 %vm1737_vm0, %v1738_v1 }
 0x3cf   :  { %1567 = vmatprep.subr.bf16.mxu1 %v1736_v0 }
 0x3d2   :  { %1569 = vmatpush3.bf16.msra.mxu1 %v1805_v7 }
 0x3d3   :  { %1570 = vmatprep.subr.bf16.mxu1 %v1736_v0 }
 0x3d6   :  { %1572 = vmatpush3.bf16.msra.mxu1 %v1819_v14 }
 0x3d7   :  { %1573 = vmatprep.subr.bf16.mxu1 %v1736_v0 }
 0x3da   :  { %1575 = vmatpush3.bf16.msra.mxu1 %v1827_v18 }
 0x3db   :  { %1576 = vmatprep.subr.bf16.mxu1 %v1736_v0 }
 0x3de   :  { %1578 = vmatpush3.bf16.msra.mxu1 %v1834_v21 }
 0x3df   :  { %1579 = vmatprep.subr.bf16.mxu1 %v1736_v0 }
 0x3e2   :  { %1581 = vmatpush3.bf16.msra.mxu1 %v1840_v24 }
 0x3e3   :  { %1582 = vmatprep.subr.bf16.mxu1 %v1736_v0 }
 0x3e6   :  { %1584 = vmatpush3.bf16.msra.mxu1 %v1846_v27 }
 0x3e7   :  { %1585 = vmatprep.subr.bf16.mxu1 %v1736_v0 }
 0x3ea   :  { %1587 = vmatpush3.bf16.msra.mxu1 %v1852_v30 }
 0x3eb   :  { %1612 = vmatprep.subr.bf16.mxu1 %v1736_v0 }
 0x4a0   :  { %v575_v6 = vpop.f32.mrb[4].mxu1 }
 0x4a1   :  { %v579_v8 = vadd.f32 %v575_v6, %v186_v4  ;;  %v1275_v9 = vpop.f32.mrb[5].mxu1 }
 0x4a3   :  { %1652 = vtanh.f32 %v579_v8 }
 0x4ad   :  { %v1653_v10 = vpop.eup %1652 }
 0x4ae   :  { %1309 = vmatmul.mubr.f32.vlgmr.msra.gmra.mrb[12].mxu0 %v1653_v10 }
 0x4af   :  { %1590 = vmatpush3.bf16.msra.mxu0 %v1802_v5  ;;  %1378 = vmatprep.mubr.msk.f32.mxu0 %vm1737_vm0, %v1738_v1  ;;  %v191_v5 = vadd.f32 %v1934_v47, %v1913_v39 }
 0x4b0   :  { %1591 = vmatprep.subr.bf16.mxu0 %v1736_v0 }
 0x4b3   :  { %1593 = vmatpush3.bf16.msra.mxu0 %v1805_v7 }
 0x4b4   :  { %1594 = vmatprep.subr.bf16.mxu0 %v1736_v0 }
 0x4b7   :  { %1596 = vmatpush3.bf16.msra.mxu0 %v1819_v14  ;;  %v802_v14 = vld [vmem:[#allocation6] sm:$0xff] }
 0x4b8   :  { %1597 = vmatprep.subr.bf16.mxu0 %v1736_v0  ;;  %v1613_v17 = vpack.c.bf16 %v803_v15, %v802_v14 }
 0x4bb   :  { %1599 = vmatpush3.bf16.msra.mxu0 %v1827_v18  ;;  %v805_v18 = vld [vmem:[#allocation6 + $0x18] sm:$0xff] }
 0x4bc   :  { %1600 = vmatprep.subr.bf16.mxu0 %v1736_v0  ;;  %v1616_v19 = vpack.c.bf16 %v805_v18, %v804_v16 }
 0x4bf   :  { %1602 = vmatpush3.bf16.msra.mxu0 %v1834_v21  ;;  %v807_v21 = vld [vmem:[#allocation6 + $0x28] sm:$0xff] }
 0x4c0   :  { %1603 = vmatprep.subr.bf16.mxu0 %v1736_v0  ;;  %v1619_v22 = vpack.c.bf16 %v807_v21, %v806_v20 }
 0x4c3   :  { %1605 = vmatpush3.bf16.msra.mxu0 %v1840_v24  ;;  %v809_v24 = vld [vmem:[#allocation6 + $0x38] sm:$0xff] }
 0x4c4   :  { %1606 = vmatprep.subr.bf16.mxu0 %v1736_v0  ;;  %v1622_v25 = vpack.c.bf16 %v809_v24, %v808_v23 }
 0x4c7   :  { %1608 = vmatpush3.bf16.msra.mxu0 %v1846_v27 }
 0x4c8   :  { %1609 = vmatprep.subr.bf16.mxu0 %v1736_v0 }
 0x4cb   :  { %1611 = vmatpush3.bf16.msra.mxu0 %v1852_v30 }
 0x581   :  { %v647_v7 = vpop.f32.mrb[12].mxu0 }
 0x582   :  { %v651_v11 = vadd.f32 %v647_v7, %v191_v5  ;;  %v1310_v12 = vpop.f32.mrb[13].mxu0 }
 0x584   :  { %1654 = vtanh.f32 %v651_v11 }
 0x58e   :  { %v1655_v13 = vpop.eup %1654 }
 0x58f   :  { %1344 = vmatmul.mubr.f32.vlgmr.msra.gmra.mrb[6].mxu1 %v1655_v13 }
 0x590   :  { %1413 = vmatprep.mubr.msk.f32.mxu1 %vm1737_vm0, %v1738_v1  ;;  %1614 = vmatpush3.bf16.msra.mxu1 %v1613_v17  ;;  %v810_v1 = vld [vmem:[#allocation6 + $0x40] sm:$0xff] }
 0x591   :  { %1615 = vmatprep.subr.bf16.mxu1 %v1736_v0  ;;  %v1625_v27 = vpack.c.bf16 %v811_v26, %v810_v1 }
 0x594   :  { %1617 = vmatpush3.bf16.msra.mxu1 %v1616_v19 }
 0x595   :  { %1618 = vmatprep.subr.bf16.mxu1 %v1736_v0 }
 0x598   :  { %1620 = vmatpush3.bf16.msra.mxu1 %v1619_v22 }
 0x599   :  { %1621 = vmatprep.subr.bf16.mxu1 %v1736_v0 }
 0x59c   :  { %1623 = vmatpush3.bf16.msra.mxu1 %v1622_v25 }
 0x59d   :  { %1624 = vmatprep.subr.bf16.mxu1 %v1736_v0 }
 0x5a0   :  { %1626 = vmatpush3.bf16.msra.mxu1 %v1625_v27 }
 0x5a1   :  { %1627 = vmatprep.subr.bf16.mxu1 %v1736_v0 }
 0x5a4   :  { %1629 = vmatpush3.bf16.msra.mxu1 %v1628_v35 }
 0x5a5   :  { %1630 = vmatprep.subr.bf16.mxu1 %v1736_v0 }
 0x5a8   :  { %1632 = vmatpush3.bf16.msra.mxu1 %v1631_v38 }
 0x5a9   :  { %1633 = vmatprep.subr.bf16.mxu1 %v1736_v0 }
 0x5ac   :  { %1635 = vmatpush3.bf16.msra.mxu1 %v1634_v42 }
 0x662   :  { %v719_v29 = vpop.f32.mrb[6].mxu1 }
 0x663   :  { %v723_v30 = vadd.f32 %v719_v29, %v196_v28  ;;  %v1345_v31 = vpop.f32.mrb[7].mxu1 }
 0x665   :  { %1656 = vtanh.f32 %v723_v30 }
 0x66f   :  { %v1657_v32 = vpop.eup %1656 }
 0x670   :  { %1379 = vmatmul.mubr.f32.vlgmr.msra.gmra.mrb[14].mxu0 %v1657_v32 }
 0x743   :  { %v791_v44 = vpop.f32.mrb[14].mxu0 }
 0x744   :  { %v795_v45 = vadd.f32 %v791_v44, %v201_v43  ;;  %v1380_v46 = vpop.f32.mrb[15].mxu0 }
 0x746   :  { %1658 = vtanh.f32 %v795_v45 }
 0x750   :  { %v1659_v47 = vpop.eup %1658 }
 0x751   :  { %1414 = vmatmul.mubr.f32.vlgmr.msra.gmra.mrb[8].mxu1 %v1659_v47 }
 0x824   :  { %v891_v50 = vpop.f32.mrb[8].mxu1 }
 0x825   :  { %v892_v51 = vadd.f32 %v921_v48, %v891_v50  ;;  %v1415_v52 = vpop.f32.mrb[9].mxu1 }
 0x827   :  { %895 = vst [vmem:[#allocation8] sm:$0xff] %v892_v51 }
 0x828   :  { %1715 = shalt.err (!%p1712_p6)
}
 0x829   :  { %s1716_s4 = scalar_lea.hbm %s2054_s6, 128 }
 0x82a   :  { %p1717_p7 = scmp.ne.s32.totalorder %s2054_s6, %s1716_s4  ;;  %p1720_p8 = scmp.lt.u32.totalorder %s1716_s4, %s2054_s6 }
 0x82c   :  { %p1722_p9 = pnand %p1720_p8, %p1717_p7 }
 0x82e   :  { %1725 = shalt.err (!%p1722_p9)
}
 0x82f   :  { %905 = dma.vmem_to_hbm [thread:$0]  %s903_s19, 128, %s2054_s6, [#allocation5]  }
 0x830   :  { %1730 = dma.done.wait [#allocation5], 128  }
 0x831   :  { %1731 = vsyncadd [#allocation5], 4294967168 }
 0x832   :  { %909 = vsyncpa [#allocation4], 1 }
 0x833   :  { %910 = vsyncpa [#allocation7], 1 }
 0x834   :  { %911 = vsyncpa [#allocation5], 1 }

</bundles_post_ra>
